<compile_context>
chip_gen: v7x
topology: tpu7x:2x2x1
jax: 0.10.0
libtpu: 0.0.40
codegen_flags: <defaults>
</compile_context>

<pallas_src>
import functools

import jax
import jax.numpy as jnp
from jax.experimental import pallas as pl
from jax.experimental.pallas import tpu as pltpu

KSIZE = 5
PAD = 2


def v_mask_attention_kernel(x_ref, w1_ref, b_ref, w2_ref, masks_ref, out_ref,
                            *, width):
    # x_ref:     (1, C, H*W)  f32  one image, channel-major, lane-dense
    # w1_ref:    (C, C)       bf16 1x1 conv weight with BN scale folded (Cout, Cin)
    # b_ref:     (C, 1)       f32  folded BN bias (per out-channel)
    # w2_ref:    (C, 25*C)    bf16 5x5 conv weight, col = (kh*5 + kw)*C + cin
    # masks_ref: (25, 1, H*W) f32  0/1 zero-padding masks, one per conv tap
    # out_ref:   (1, C, H*W)  f32
    hw = x_ref.shape[2]

    x = x_ref[0]                                        # (C, HW) f32, dense load

    # --- 1x1 conv + folded BatchNorm (eval mode); bf16 MXU operands, f32 acc.
    # Channel-major orientation: N = H*W fills the MXU columns.
    y = jnp.dot(w1_ref[...], x.astype(jnp.bfloat16),
                preferred_element_type=jnp.float32) + b_ref[...]      # (C, HW) f32

    # --- 5x5 conv (padding=2) as ONE MXU contraction with K = 25*C.
    # Tap (kh, kw) is y shifted by (kh-2)*W + (kw-2) lanes; the border mask
    # restores zero-padding and zeroes every row-wrapped / buffer-wrapped lane.
    taps = []
    for kh in range(KSIZE):
        for kw in range(KSIZE):
            dh, dw = kh - PAD, kw - PAD
            if dh == 0 and dw == 0:
                taps.append(y)                          # center tap: identity
            else:
                shift = dh * width + dw
                rolled = pltpu.roll(y, shift=(-shift) % hw, axis=1)    # XLU
                taps.append(rolled * masks_ref[kh * KSIZE + kw])       # (C,HW)*(1,HW)
    # Sublane-aligned stack (each piece is 8 f32 rows at an 8-row offset) ->
    # plain dense copies, unlike the old lane-offset concatenate.
    patch = jnp.concatenate(taps, axis=0)               # (25*C, HW) f32
    z = jnp.dot(w2_ref[...], patch.astype(jnp.bfloat16),
                preferred_element_type=jnp.float32)     # (C, HW) f32

    # --- sigmoid gate + residual in the I/O layout: pure EUP+VPU, dense store.
    out_ref[0] = x * (1.0 + jax.nn.sigmoid(z))


def make_tap_masks(height, width):
    """(25, 1, H*W) 0/1 masks encoding the 5x5 zero-padding border per tap."""
    hh = jnp.arange(height, dtype=jnp.int32).reshape(height, 1)
    ww = jnp.arange(width, dtype=jnp.int32).reshape(1, width)
    masks = []
    for kh in range(KSIZE):
        for kw in range(KSIZE):
            dh, dw = kh - PAD, kw - PAD
            valid = ((hh + dh >= 0) & (hh + dh < height)
                     & (ww + dw >= 0) & (ww + dw < width))
            masks.append(valid.reshape(1, height * width))
    return jnp.stack(masks, axis=0).astype(jnp.float32)


def v_mask_attention(x_cm, w1_cm, bias, w2_cm, masks, width):
    """x_cm: (N, C, H*W) f32 channel-major images. Returns (N, C, H*W) f32."""
    n, c, hw = x_cm.shape
    ntaps = KSIZE * KSIZE
    kernel = functools.partial(v_mask_attention_kernel, width=width)
    # TODO(synk): at production H*W, switch the per-image block to an H-stripe
    # grid (stripe height a multiple of 8, 2-row halo folded into the masks /
    # roll shifts) to stay inside v7x's 64 MiB VMEM; and for large N process a
    # few images per step while keeping >= 2 grid steps for the two v7x TCs.
    return pl.pallas_call(
        kernel,
        out_shape=jax.ShapeDtypeStruct((n, c, hw), x_cm.dtype),
        grid_spec=pltpu.PrefetchScalarGridSpec(
            num_scalar_prefetch=0,
            grid=(n,),
            in_specs=[
                pl.BlockSpec((1, c, hw), lambda i: (i, 0, 0)),
                pl.BlockSpec((c, c), lambda i: (0, 0)),
                pl.BlockSpec((c, 1), lambda i: (0, 0)),
                pl.BlockSpec((c, ntaps * c), lambda i: (0, 0)),
                pl.BlockSpec((ntaps, 1, hw), lambda i: (0, 0, 0)),
            ],
            out_specs=pl.BlockSpec((1, c, hw), lambda i: (i, 0, 0)),
        ),
        compiler_params=pltpu.CompilerParams(
            dimension_semantics=("parallel",),
            vmem_limit_bytes=32 * 1024 * 1024),
    )(x_cm, w1_cm, bias, w2_cm, masks)


if __name__ == "__main__":
    key = jax.random.PRNGKey(0)
    N, C, H, W = 2, 8, 16, 16            # H*W = 256 -> lane-dense channel-major slabs
    ks = jax.random.split(key, 7)

    x_nchw = jax.random.normal(ks[0], (N, C, H, W), jnp.float32)

    # Parameters matching the module's __init__ shapes.
    # (conv1 exists in __init__ but is unused in forward -> not materialized.)
    w1 = 0.1 * jax.random.normal(ks[1], (C, C), jnp.float32)            # Conv1x1 (Cout, Cin)
    gamma = 1.0 + 0.1 * jax.random.normal(ks[2], (C,), jnp.float32)     # BN weight
    beta = 0.1 * jax.random.normal(ks[3], (C,), jnp.float32)            # BN bias
    running_mean = 0.1 * jax.random.normal(ks[4], (C,), jnp.float32)
    running_var = jax.random.uniform(ks[5], (C,), jnp.float32, 0.5, 1.5)
    w2 = 0.05 * jax.random.normal(ks[6], (C, C, KSIZE, KSIZE), jnp.float32)  # Conv5x5 (Cout,Cin,kh,kw)

    eps = 1e-5
    # Fold eval-mode BatchNorm into the 1x1 conv; build channel-major weights.
    scale = gamma / jnp.sqrt(running_var + eps)
    w1_cm = (w1 * scale[:, None]).astype(jnp.bfloat16)                  # (Cout, Cin)
    bias = (beta - scale * running_mean).reshape(C, 1)                  # f32 (C, 1)
    # w2 -> column index (kh*5 + kw)*Cin + cin
    w2_cm = jnp.transpose(w2, (0, 2, 3, 1)).reshape(
        C, KSIZE * KSIZE * C).astype(jnp.bfloat16)
    masks = make_tap_masks(H, W)                                        # (25, 1, H*W)

    # NCHW -> channel-major lane-dense (N, C, H*W): a free reshape, no transpose.
    x_cm = x_nchw.reshape(N, C, H * W)
    out_cm = v_mask_attention(x_cm, w1_cm, bias, w2_cm, masks, W)
    out_nchw = out_cm.reshape(N, C, H, W)
    jax.block_until_ready(out_nchw)

    # Pure-f32 reference matching the PyTorch module (BN in eval mode).
    y_ref = jnp.einsum('nchw,oc->nohw', x_nchw, w1)
    y_ref = ((y_ref - running_mean[None, :, None, None])
             * scale[None, :, None, None] + beta[None, :, None, None])
    z_ref = jax.lax.conv_general_dilated(
        y_ref, w2, window_strides=(1, 1), padding=((PAD, PAD), (PAD, PAD)),
        dimension_numbers=('NCHW', 'OIHW', 'NCHW'))
    ref_nchw = x_nchw + x_nchw * jax.nn.sigmoid(z_ref)

    # bf16 MXU operands with f32 accumulation -> <~1e-3 deviation at these scales.
    assert jnp.allclose(out_nchw, ref_nchw, atol=5e-3, rtol=5e-3), \
        "mismatch vs f32 reference"
    print("KERNEL_OK")
</pallas_src>

<mosaic_0001>
module attributes {stable_mosaic.version = 11 : i64} {
  func.func @v_mask_attention_kernel(%arg0: i32, %arg1: memref<1x8x256xf32, #tpu.memory_space<vmem>>, %arg2: memref<8x8xbf16, #tpu.memory_space<vmem>>, %arg3: memref<8x1xf32, #tpu.memory_space<vmem>>, %arg4: memref<8x200xbf16, #tpu.memory_space<vmem>>, %arg5: memref<25x1x256xf32, #tpu.memory_space<vmem>>, %arg6: memref<1x8x256xf32, #tpu.memory_space<vmem>>) attributes {dimension_semantics = [#tpu.dimension_semantics<parallel>], iteration_bounds = array<i64: 2>, scalar_prefetch = 0 : i64, scratch_operands = 0 : i64, tpu.core_type = #tpu.core_type<tc>, window_params = [{transform_indices = @transform_0, window_bounds = array<i64: 1, 8, 256>}, {pipeline_mode = #tpu.pipeline_mode<synchronous>, transform_indices = @transform_1, window_bounds = array<i64: 8, 8>}, {pipeline_mode = #tpu.pipeline_mode<synchronous>, transform_indices = @transform_2, window_bounds = array<i64: 8, 1>}, {pipeline_mode = #tpu.pipeline_mode<synchronous>, transform_indices = @transform_3, window_bounds = array<i64: 8, 200>}, {pipeline_mode = #tpu.pipeline_mode<synchronous>, transform_indices = @transform_4, window_bounds = array<i64: 25, 1, 256>}, {transform_indices = @transform_5, window_bounds = array<i64: 1, 8, 256>}]} {
    %c0 = arith.constant 0 : index
    %c0_0 = arith.constant 0 : index
    %c0_1 = arith.constant 0 : index
    %0 = vector.load %arg1[%c0, %c0_0, %c0_1] : memref<1x8x256xf32, #tpu.memory_space<vmem>>, vector<1x8x256xf32>
    %1 = vector.shape_cast %0 : vector<1x8x256xf32> to vector<8x256xf32>
    %c0_2 = arith.constant 0 : index
    %c0_3 = arith.constant 0 : index
    %2 = vector.load %arg2[%c0_2, %c0_3] : memref<8x8xbf16, #tpu.memory_space<vmem>>, vector<8x8xbf16>
    %3 = arith.truncf %1 : vector<8x256xf32> to vector<8x256xbf16>
    %cst = arith.constant dense<0.000000e+00> : vector<8x256xf32>
    %4 = tpu.matmul %2, %3, %cst {dimension_numbers = #tpu.dot_dimension_numbers<[1], [0], [0], [1], [0, 0, 1, 1], [], []>} : vector<8x8xbf16>, vector<8x256xbf16>, vector<8x256xf32> -> vector<8x256xf32>
    %c0_4 = arith.constant 0 : index
    %c0_5 = arith.constant 0 : index
    %5 = vector.load %arg3[%c0_4, %c0_5] : memref<8x1xf32, #tpu.memory_space<vmem>>, vector<8x1xf32>
    %6 = vector.broadcast %5 : vector<8x1xf32> to vector<8x256xf32>
    %7 = arith.addf %4, %6 : vector<8x256xf32>
    %c34_i32 = arith.constant 34 : i32
    %8 = tpu.dynamic_rotate %7 by %c34_i32 dim 1 : vector<8x256xf32>, i32 -> vector<8x256xf32>
    %c0_6 = arith.constant 0 : index
    %c0_7 = arith.constant 0 : index
    %c0_8 = arith.constant 0 : index
    %9 = vector.load %arg5[%c0_6, %c0_7, %c0_8] : memref<25x1x256xf32, #tpu.memory_space<vmem>>, vector<1x1x256xf32>
    %10 = vector.shape_cast %9 : vector<1x1x256xf32> to vector<1x256xf32>
    %11 = vector.broadcast %10 : vector<1x256xf32> to vector<8x256xf32>
    %12 = arith.mulf %8, %11 : vector<8x256xf32>
    %c33_i32 = arith.constant 33 : i32
    %13 = tpu.dynamic_rotate %7 by %c33_i32 dim 1 : vector<8x256xf32>, i32 -> vector<8x256xf32>
    %c1 = arith.constant 1 : index
    %c0_9 = arith.constant 0 : index
    %c0_10 = arith.constant 0 : index
    %14 = vector.load %arg5[%c1, %c0_9, %c0_10] : memref<25x1x256xf32, #tpu.memory_space<vmem>>, vector<1x1x256xf32>
    %15 = vector.shape_cast %14 : vector<1x1x256xf32> to vector<1x256xf32>
    %16 = vector.broadcast %15 : vector<1x256xf32> to vector<8x256xf32>
    %17 = arith.mulf %13, %16 : vector<8x256xf32>
    %c32_i32 = arith.constant 32 : i32
    %18 = tpu.dynamic_rotate %7 by %c32_i32 dim 1 : vector<8x256xf32>, i32 -> vector<8x256xf32>
    %c2 = arith.constant 2 : index
    %c0_11 = arith.constant 0 : index
    %c0_12 = arith.constant 0 : index
    %19 = vector.load %arg5[%c2, %c0_11, %c0_12] : memref<25x1x256xf32, #tpu.memory_space<vmem>>, vector<1x1x256xf32>
    %20 = vector.shape_cast %19 : vector<1x1x256xf32> to vector<1x256xf32>
    %21 = vector.broadcast %20 : vector<1x256xf32> to vector<8x256xf32>
    %22 = arith.mulf %18, %21 : vector<8x256xf32>
    %c31_i32 = arith.constant 31 : i32
    %23 = tpu.dynamic_rotate %7 by %c31_i32 dim 1 : vector<8x256xf32>, i32 -> vector<8x256xf32>
    %c3 = arith.constant 3 : index
    %c0_13 = arith.constant 0 : index
    %c0_14 = arith.constant 0 : index
    %24 = vector.load %arg5[%c3, %c0_13, %c0_14] : memref<25x1x256xf32, #tpu.memory_space<vmem>>, vector<1x1x256xf32>
    %25 = vector.shape_cast %24 : vector<1x1x256xf32> to vector<1x256xf32>
    %26 = vector.broadcast %25 : vector<1x256xf32> to vector<8x256xf32>
    %27 = arith.mulf %23, %26 : vector<8x256xf32>
    %c30_i32 = arith.constant 30 : i32
    %28 = tpu.dynamic_rotate %7 by %c30_i32 dim 1 : vector<8x256xf32>, i32 -> vector<8x256xf32>
    %c4 = arith.constant 4 : index
    %c0_15 = arith.constant 0 : index
    %c0_16 = arith.constant 0 : index
    %29 = vector.load %arg5[%c4, %c0_15, %c0_16] : memref<25x1x256xf32, #tpu.memory_space<vmem>>, vector<1x1x256xf32>
    %30 = vector.shape_cast %29 : vector<1x1x256xf32> to vector<1x256xf32>
    %31 = vector.broadcast %30 : vector<1x256xf32> to vector<8x256xf32>
    %32 = arith.mulf %28, %31 : vector<8x256xf32>
    %c18_i32 = arith.constant 18 : i32
    %33 = tpu.dynamic_rotate %7 by %c18_i32 dim 1 : vector<8x256xf32>, i32 -> vector<8x256xf32>
    %c5 = arith.constant 5 : index
    %c0_17 = arith.constant 0 : index
    %c0_18 = arith.constant 0 : index
    %34 = vector.load %arg5[%c5, %c0_17, %c0_18] : memref<25x1x256xf32, #tpu.memory_space<vmem>>, vector<1x1x256xf32>
    %35 = vector.shape_cast %34 : vector<1x1x256xf32> to vector<1x256xf32>
    %36 = vector.broadcast %35 : vector<1x256xf32> to vector<8x256xf32>
    %37 = arith.mulf %33, %36 : vector<8x256xf32>
    %c17_i32 = arith.constant 17 : i32
    %38 = tpu.dynamic_rotate %7 by %c17_i32 dim 1 : vector<8x256xf32>, i32 -> vector<8x256xf32>
    %c6 = arith.constant 6 : index
    %c0_19 = arith.constant 0 : index
    %c0_20 = arith.constant 0 : index
    %39 = vector.load %arg5[%c6, %c0_19, %c0_20] : memref<25x1x256xf32, #tpu.memory_space<vmem>>, vector<1x1x256xf32>
    %40 = vector.shape_cast %39 : vector<1x1x256xf32> to vector<1x256xf32>
    %41 = vector.broadcast %40 : vector<1x256xf32> to vector<8x256xf32>
    %42 = arith.mulf %38, %41 : vector<8x256xf32>
    %c16_i32 = arith.constant 16 : i32
    %43 = tpu.dynamic_rotate %7 by %c16_i32 dim 1 : vector<8x256xf32>, i32 -> vector<8x256xf32>
    %c7 = arith.constant 7 : index
    %c0_21 = arith.constant 0 : index
    %c0_22 = arith.constant 0 : index
    %44 = vector.load %arg5[%c7, %c0_21, %c0_22] : memref<25x1x256xf32, #tpu.memory_space<vmem>>, vector<1x1x256xf32>
    %45 = vector.shape_cast %44 : vector<1x1x256xf32> to vector<1x256xf32>
    %46 = vector.broadcast %45 : vector<1x256xf32> to vector<8x256xf32>
    %47 = arith.mulf %43, %46 : vector<8x256xf32>
    %c15_i32 = arith.constant 15 : i32
    %48 = tpu.dynamic_rotate %7 by %c15_i32 dim 1 : vector<8x256xf32>, i32 -> vector<8x256xf32>
    %c8 = arith.constant 8 : index
    %c0_23 = arith.constant 0 : index
    %c0_24 = arith.constant 0 : index
    %49 = vector.load %arg5[%c8, %c0_23, %c0_24] : memref<25x1x256xf32, #tpu.memory_space<vmem>>, vector<1x1x256xf32>
    %50 = vector.shape_cast %49 : vector<1x1x256xf32> to vector<1x256xf32>
    %51 = vector.broadcast %50 : vector<1x256xf32> to vector<8x256xf32>
    %52 = arith.mulf %48, %51 : vector<8x256xf32>
    %c14_i32 = arith.constant 14 : i32
    %53 = tpu.dynamic_rotate %7 by %c14_i32 dim 1 : vector<8x256xf32>, i32 -> vector<8x256xf32>
    %c9 = arith.constant 9 : index
    %c0_25 = arith.constant 0 : index
    %c0_26 = arith.constant 0 : index
    %54 = vector.load %arg5[%c9, %c0_25, %c0_26] : memref<25x1x256xf32, #tpu.memory_space<vmem>>, vector<1x1x256xf32>
    %55 = vector.shape_cast %54 : vector<1x1x256xf32> to vector<1x256xf32>
    %56 = vector.broadcast %55 : vector<1x256xf32> to vector<8x256xf32>
    %57 = arith.mulf %53, %56 : vector<8x256xf32>
    %c2_i32 = arith.constant 2 : i32
    %58 = tpu.dynamic_rotate %7 by %c2_i32 dim 1 : vector<8x256xf32>, i32 -> vector<8x256xf32>
    %c10 = arith.constant 10 : index
    %c0_27 = arith.constant 0 : index
    %c0_28 = arith.constant 0 : index
    %59 = vector.load %arg5[%c10, %c0_27, %c0_28] : memref<25x1x256xf32, #tpu.memory_space<vmem>>, vector<1x1x256xf32>
    %60 = vector.shape_cast %59 : vector<1x1x256xf32> to vector<1x256xf32>
    %61 = vector.broadcast %60 : vector<1x256xf32> to vector<8x256xf32>
    %62 = arith.mulf %58, %61 : vector<8x256xf32>
    %c1_i32 = arith.constant 1 : i32
    %63 = tpu.dynamic_rotate %7 by %c1_i32 dim 1 : vector<8x256xf32>, i32 -> vector<8x256xf32>
    %c11 = arith.constant 11 : index
    %c0_29 = arith.constant 0 : index
    %c0_30 = arith.constant 0 : index
    %64 = vector.load %arg5[%c11, %c0_29, %c0_30] : memref<25x1x256xf32, #tpu.memory_space<vmem>>, vector<1x1x256xf32>
    %65 = vector.shape_cast %64 : vector<1x1x256xf32> to vector<1x256xf32>
    %66 = vector.broadcast %65 : vector<1x256xf32> to vector<8x256xf32>
    %67 = arith.mulf %63, %66 : vector<8x256xf32>
    %c255_i32 = arith.constant 255 : i32
    %68 = tpu.dynamic_rotate %7 by %c255_i32 dim 1 : vector<8x256xf32>, i32 -> vector<8x256xf32>
    %c13 = arith.constant 13 : index
    %c0_31 = arith.constant 0 : index
    %c0_32 = arith.constant 0 : index
    %69 = vector.load %arg5[%c13, %c0_31, %c0_32] : memref<25x1x256xf32, #tpu.memory_space<vmem>>, vector<1x1x256xf32>
    %70 = vector.shape_cast %69 : vector<1x1x256xf32> to vector<1x256xf32>
    %71 = vector.broadcast %70 : vector<1x256xf32> to vector<8x256xf32>
    %72 = arith.mulf %68, %71 : vector<8x256xf32>
    %c254_i32 = arith.constant 254 : i32
    %73 = tpu.dynamic_rotate %7 by %c254_i32 dim 1 : vector<8x256xf32>, i32 -> vector<8x256xf32>
    %c14 = arith.constant 14 : index
    %c0_33 = arith.constant 0 : index
    %c0_34 = arith.constant 0 : index
    %74 = vector.load %arg5[%c14, %c0_33, %c0_34] : memref<25x1x256xf32, #tpu.memory_space<vmem>>, vector<1x1x256xf32>
    %75 = vector.shape_cast %74 : vector<1x1x256xf32> to vector<1x256xf32>
    %76 = vector.broadcast %75 : vector<1x256xf32> to vector<8x256xf32>
    %77 = arith.mulf %73, %76 : vector<8x256xf32>
    %c242_i32 = arith.constant 242 : i32
    %78 = tpu.dynamic_rotate %7 by %c242_i32 dim 1 : vector<8x256xf32>, i32 -> vector<8x256xf32>
    %c15 = arith.constant 15 : index
    %c0_35 = arith.constant 0 : index
    %c0_36 = arith.constant 0 : index
    %79 = vector.load %arg5[%c15, %c0_35, %c0_36] : memref<25x1x256xf32, #tpu.memory_space<vmem>>, vector<1x1x256xf32>
    %80 = vector.shape_cast %79 : vector<1x1x256xf32> to vector<1x256xf32>
    %81 = vector.broadcast %80 : vector<1x256xf32> to vector<8x256xf32>
    %82 = arith.mulf %78, %81 : vector<8x256xf32>
    %c241_i32 = arith.constant 241 : i32
    %83 = tpu.dynamic_rotate %7 by %c241_i32 dim 1 : vector<8x256xf32>, i32 -> vector<8x256xf32>
    %c16 = arith.constant 16 : index
    %c0_37 = arith.constant 0 : index
    %c0_38 = arith.constant 0 : index
    %84 = vector.load %arg5[%c16, %c0_37, %c0_38] : memref<25x1x256xf32, #tpu.memory_space<vmem>>, vector<1x1x256xf32>
    %85 = vector.shape_cast %84 : vector<1x1x256xf32> to vector<1x256xf32>
    %86 = vector.broadcast %85 : vector<1x256xf32> to vector<8x256xf32>
    %87 = arith.mulf %83, %86 : vector<8x256xf32>
    %c240_i32 = arith.constant 240 : i32
    %88 = tpu.dynamic_rotate %7 by %c240_i32 dim 1 : vector<8x256xf32>, i32 -> vector<8x256xf32>
    %c17 = arith.constant 17 : index
    %c0_39 = arith.constant 0 : index
    %c0_40 = arith.constant 0 : index
    %89 = vector.load %arg5[%c17, %c0_39, %c0_40] : memref<25x1x256xf32, #tpu.memory_space<vmem>>, vector<1x1x256xf32>
    %90 = vector.shape_cast %89 : vector<1x1x256xf32> to vector<1x256xf32>
    %91 = vector.broadcast %90 : vector<1x256xf32> to vector<8x256xf32>
    %92 = arith.mulf %88, %91 : vector<8x256xf32>
    %c239_i32 = arith.constant 239 : i32
    %93 = tpu.dynamic_rotate %7 by %c239_i32 dim 1 : vector<8x256xf32>, i32 -> vector<8x256xf32>
    %c18 = arith.constant 18 : index
    %c0_41 = arith.constant 0 : index
    %c0_42 = arith.constant 0 : index
    %94 = vector.load %arg5[%c18, %c0_41, %c0_42] : memref<25x1x256xf32, #tpu.memory_space<vmem>>, vector<1x1x256xf32>
    %95 = vector.shape_cast %94 : vector<1x1x256xf32> to vector<1x256xf32>
    %96 = vector.broadcast %95 : vector<1x256xf32> to vector<8x256xf32>
    %97 = arith.mulf %93, %96 : vector<8x256xf32>
    %c238_i32 = arith.constant 238 : i32
    %98 = tpu.dynamic_rotate %7 by %c238_i32 dim 1 : vector<8x256xf32>, i32 -> vector<8x256xf32>
    %c19 = arith.constant 19 : index
    %c0_43 = arith.constant 0 : index
    %c0_44 = arith.constant 0 : index
    %99 = vector.load %arg5[%c19, %c0_43, %c0_44] : memref<25x1x256xf32, #tpu.memory_space<vmem>>, vector<1x1x256xf32>
    %100 = vector.shape_cast %99 : vector<1x1x256xf32> to vector<1x256xf32>
    %101 = vector.broadcast %100 : vector<1x256xf32> to vector<8x256xf32>
    %102 = arith.mulf %98, %101 : vector<8x256xf32>
    %c226_i32 = arith.constant 226 : i32
    %103 = tpu.dynamic_rotate %7 by %c226_i32 dim 1 : vector<8x256xf32>, i32 -> vector<8x256xf32>
    %c20 = arith.constant 20 : index
    %c0_45 = arith.constant 0 : index
    %c0_46 = arith.constant 0 : index
    %104 = vector.load %arg5[%c20, %c0_45, %c0_46] : memref<25x1x256xf32, #tpu.memory_space<vmem>>, vector<1x1x256xf32>
    %105 = vector.shape_cast %104 : vector<1x1x256xf32> to vector<1x256xf32>
    %106 = vector.broadcast %105 : vector<1x256xf32> to vector<8x256xf32>
    %107 = arith.mulf %103, %106 : vector<8x256xf32>
    %c225_i32 = arith.constant 225 : i32
    %108 = tpu.dynamic_rotate %7 by %c225_i32 dim 1 : vector<8x256xf32>, i32 -> vector<8x256xf32>
    %c21 = arith.constant 21 : index
    %c0_47 = arith.constant 0 : index
    %c0_48 = arith.constant 0 : index
    %109 = vector.load %arg5[%c21, %c0_47, %c0_48] : memref<25x1x256xf32, #tpu.memory_space<vmem>>, vector<1x1x256xf32>
    %110 = vector.shape_cast %109 : vector<1x1x256xf32> to vector<1x256xf32>
    %111 = vector.broadcast %110 : vector<1x256xf32> to vector<8x256xf32>
    %112 = arith.mulf %108, %111 : vector<8x256xf32>
    %c224_i32 = arith.constant 224 : i32
    %113 = tpu.dynamic_rotate %7 by %c224_i32 dim 1 : vector<8x256xf32>, i32 -> vector<8x256xf32>
    %c22 = arith.constant 22 : index
    %c0_49 = arith.constant 0 : index
    %c0_50 = arith.constant 0 : index
    %114 = vector.load %arg5[%c22, %c0_49, %c0_50] : memref<25x1x256xf32, #tpu.memory_space<vmem>>, vector<1x1x256xf32>
    %115 = vector.shape_cast %114 : vector<1x1x256xf32> to vector<1x256xf32>
    %116 = vector.broadcast %115 : vector<1x256xf32> to vector<8x256xf32>
    %117 = arith.mulf %113, %116 : vector<8x256xf32>
    %c223_i32 = arith.constant 223 : i32
    %118 = tpu.dynamic_rotate %7 by %c223_i32 dim 1 : vector<8x256xf32>, i32 -> vector<8x256xf32>
    %c23 = arith.constant 23 : index
    %c0_51 = arith.constant 0 : index
    %c0_52 = arith.constant 0 : index
    %119 = vector.load %arg5[%c23, %c0_51, %c0_52] : memref<25x1x256xf32, #tpu.memory_space<vmem>>, vector<1x1x256xf32>
    %120 = vector.shape_cast %119 : vector<1x1x256xf32> to vector<1x256xf32>
    %121 = vector.broadcast %120 : vector<1x256xf32> to vector<8x256xf32>
    %122 = arith.mulf %118, %121 : vector<8x256xf32>
    %c222_i32 = arith.constant 222 : i32
    %123 = tpu.dynamic_rotate %7 by %c222_i32 dim 1 : vector<8x256xf32>, i32 -> vector<8x256xf32>
    %c24 = arith.constant 24 : index
    %c0_53 = arith.constant 0 : index
    %c0_54 = arith.constant 0 : index
    %124 = vector.load %arg5[%c24, %c0_53, %c0_54] : memref<25x1x256xf32, #tpu.memory_space<vmem>>, vector<1x1x256xf32>
    %125 = vector.shape_cast %124 : vector<1x1x256xf32> to vector<1x256xf32>
    %126 = vector.broadcast %125 : vector<1x256xf32> to vector<8x256xf32>
    %127 = arith.mulf %123, %126 : vector<8x256xf32>
    %128 = tpu.concatenate %12, %17, %22, %27, %32, %37, %42, %47, %52, %57, %62, %67, %7, %72, %77, %82 in 0 : vector<8x256xf32>, vector<8x256xf32>, vector<8x256xf32>, vector<8x256xf32>, vector<8x256xf32>, vector<8x256xf32>, vector<8x256xf32>, vector<8x256xf32>, vector<8x256xf32>, vector<8x256xf32>, vector<8x256xf32>, vector<8x256xf32>, vector<8x256xf32>, vector<8x256xf32>, vector<8x256xf32>, vector<8x256xf32> -> vector<128x256xf32>
    %129 = tpu.concatenate %87, %92, %97, %102, %107, %112, %117, %122, %127 in 0 : vector<8x256xf32>, vector<8x256xf32>, vector<8x256xf32>, vector<8x256xf32>, vector<8x256xf32>, vector<8x256xf32>, vector<8x256xf32>, vector<8x256xf32>, vector<8x256xf32> -> vector<72x256xf32>
    %130 = tpu.concatenate %128, %129 in 0 : vector<128x256xf32>, vector<72x256xf32> -> vector<200x256xf32>
    %c0_55 = arith.constant 0 : index
    %c0_56 = arith.constant 0 : index
    %131 = vector.load %arg4[%c0_55, %c0_56] : memref<8x200xbf16, #tpu.memory_space<vmem>>, vector<8x200xbf16>
    %132 = arith.truncf %130 : vector<200x256xf32> to vector<200x256xbf16>
    %cst_57 = arith.constant dense<0.000000e+00> : vector<8x256xf32>
    %133 = tpu.matmul %131, %132, %cst_57 {dimension_numbers = #tpu.dot_dimension_numbers<[1], [0], [0], [1], [0, 0, 1, 1], [], []>} : vector<8x200xbf16>, vector<200x256xbf16>, vector<8x256xf32> -> vector<8x256xf32>
    %134 = arith.negf %133 : vector<8x256xf32>
    %135 = math.exp %134 : vector<8x256xf32>
    %cst_58 = arith.constant 1.000000e+00 : f32
    %136 = vector.broadcast %cst_58 : f32 to vector<8x256xf32>
    %137 = arith.addf %136, %135 : vector<8x256xf32>
    %138 = arith.divf %136, %137 : vector<8x256xf32>
    %cst_59 = arith.constant 1.000000e+00 : f32
    %139 = vector.broadcast %cst_59 : f32 to vector<8x256xf32>
    %140 = arith.addf %139, %138 : vector<8x256xf32>
    %141 = arith.mulf %1, %140 : vector<8x256xf32>
    %c0_60 = arith.constant 0 : index
    %c0_61 = arith.constant 0 : index
    %c0_62 = arith.constant 0 : index
    %142 = vector.load %arg6[%c0_60, %c0_61, %c0_62] : memref<1x8x256xf32, #tpu.memory_space<vmem>>, vector<1x8x256xf32>
    %143 = vector.shape_cast %142 : vector<1x8x256xf32> to vector<8x256xf32>
    %144 = vector.shape_cast %141 : vector<8x256xf32> to vector<1x8x256xf32>
    tpu.vector_store %arg6[%c0_60, %c0_61, %c0_62], %144 {strides = array<i32>} : memref<1x8x256xf32, #tpu.memory_space<vmem>>, vector<1x8x256xf32>,
    return
  }
  func.func @transform_0(%arg0: i32) -> (i32, i32, i32) {
    %c0_i32 = arith.constant 0 : i32
    %c0_i32_0 = arith.constant 0 : i32
    %c0_i32_1 = arith.constant 0 : i32
    return %arg0, %c0_i32, %c0_i32_0 : i32, i32, i32
  }
  func.func @transform_1(%arg0: i32) -> (i32, i32) {
    %c0_i32 = arith.constant 0 : i32
    %c0_i32_0 = arith.constant 0 : i32
    %c0_i32_1 = arith.constant 0 : i32
    return %c0_i32, %c0_i32_0 : i32, i32
  }
  func.func @transform_2(%arg0: i32) -> (i32, i32) {
    %c0_i32 = arith.constant 0 : i32
    %c0_i32_0 = arith.constant 0 : i32
    %c0_i32_1 = arith.constant 0 : i32
    return %c0_i32, %c0_i32_0 : i32, i32
  }
  func.func @transform_3(%arg0: i32) -> (i32, i32) {
    %c0_i32 = arith.constant 0 : i32
    %c0_i32_0 = arith.constant 0 : i32
    %c0_i32_1 = arith.constant 0 : i32
    return %c0_i32, %c0_i32_0 : i32, i32
  }
  func.func @transform_4(%arg0: i32) -> (i32, i32, i32) {
    %c0_i32 = arith.constant 0 : i32
    %c0_i32_0 = arith.constant 0 : i32
    %c0_i32_1 = arith.constant 0 : i32
    %c0_i32_2 = arith.constant 0 : i32
    return %c0_i32, %c0_i32_0, %c0_i32_1 : i32, i32, i32
  }
  func.func @transform_5(%arg0: i32) -> (i32, i32, i32) {
    %c0_i32 = arith.constant 0 : i32
    %c0_i32_0 = arith.constant 0 : i32
    %c0_i32_1 = arith.constant 0 : i32
    return %arg0, %c0_i32, %c0_i32_0 : i32, i32, i32
  }
}

</mosaic_0001>

<bundles_post_ra>
// kernel: tpu_custom_call.1
= control target key start
LH: loop header
LB: loop body
LE: loop exit
PB: predicated region body
PF: predicated region fallthrough
CT: control target
= control target key end

     0   :  { %10 = vsyncpa [#allocation3], 0  ;;  %s1900_s0 = inlined_call_operand.hbm [shape: f32[2,8,256], index: 0, kind: input, shape index: {}]   ;;  %s1901_s1 = inlined_call_operand.vmem [shape: bf16[8,8], index: 1, kind: input, shape index: {}]   ;;  %s1902_s2 = inlined_call_operand.vmem [shape: f32[8,1], index: 2, kind: input, shape index: {}]   ;;  %s1903_s3 = inlined_call_operand.vmem [shape: bf16[8,200], index: 3, kind: input, shape index: {}]   ;;  %s1904_s4 = inlined_call_operand.hbm [shape: f32[25,1,256], index: 4, kind: input, shape index: {}]   ;;  %s1905_s5 = inlined_call_operand.hbm [shape: f32[2,8,256], index: 5, kind: output, shape index: {}]  }
   0x1   :  { %12 = vsyncpa [#allocation3 + $0x1], 0 }
   0x2   :  { %13 = vsyncpa [#allocation6], 0 }
   0x3   :  { %14 = vsyncpa [#allocation4], 0 }
   0x4   :  { %16 = vsyncpa [#allocation4 + $0x1], 0  ;;  %s1357_s18 = smov 0   ;;  %s1359_s19 = smov 0  }
   0x5   :  { %s1361_s20 = smov 0   ;;  %s1363_s21 = smov 0  }
   0x6 LB: > { %s1378_s22 = sadd.s32 4294967295, %s1295_s21   ;;  %s1046_s23 = sadd.s32 4294967294, %s1295_s21   ;;  %s1295_s21 = sphi %s1363_s21, %s1925_s21   ;;  %s1291_s20 = sphi %s1361_s20, %s1924_s20   ;;  %s1287_s19 = sphi %s1359_s19, %s1923_s19   ;;  %s1283_s18 = sphi %s1357_s18, %s1922_s18  }
   0x7   : > { %p42_p0 = scmp.ne.s32.totalorder %s1287_s19, %s1283_s18  ;;  %p1906_p1 = scmp.eq.s32.totalorder %s1378_s22, 0 }
   0x8   : > { %p156_p3 = scmp.eq.s32.totalorder %s1046_s23, 1  ;;  %p1047_p5 = scmp.ge.s32.totalorder %s1295_s21, 1 }
   0x9   : > { %p1387_p4 = por %p1906_p1, %p42_p0  ;;  %p163_p7 = scmp.lt.s32.totalorder %s1295_s21, 3 }
   0xa   : > { %p1392_p6 = por %p156_p3, %p42_p0  ;;  %s1297_s27 = smov [#allocation5]  }
   0xb   : > { %s1909_s24 = scalar_select %p1387_p4, 1, 0 }
   0xc   : > { %s1910_s25 = scalar_select %p1392_p6, 1, 0 }
   0xd   : > { %p1397_p8 = pnand %p1047_p5, %p163_p7  ;;  %s184_s28 = sshll.u32 %s1297_s27, 4  ;;  %s1401_s28 = int_to_ptr.vmem [resolvable:$true] %s184_s28 }
   0xe   : > { %s1413_s30 = sadd.s32 1, %s1295_s21   ;;  %s29_s6 = sadd.s32 1, %s1291_s20 }
   0xf   : > { %s1911_s26 = scalar_select %p1397_p8, 1, 0 }
  0x10   : > { %p1080_p9 = pneg %p1397_p8  ;;  %s26_s7 = ssub.s32 %s1295_s21, %s1413_s30 }
  0x11   : > { %s1167_s10 = scalar_lea.hbm %s1904_s4, 800 }
  0x12   : > { %p1408_p11 = pnand %p1080_p9, %p1906_p1  ;;  %p1168_p12 = scmp.ne.s32.totalorder %s1904_s4, %s1167_s10 }
  0x13   : > { %p1174_p5 = scmp.lt.u32.totalorder %s1167_s10, %s1904_s4 }
  0x14   : > { %p1169_p13 = pneg %p1408_p11 }
  0x16   : > { %p1170_p0 = pnand %p1169_p13, %p1168_p12 }
  0x18   : > { %p1171_p3 = pneg %p1170_p0 }
  0x1a   : > { %p1176_p7 = pnand %p1174_p5, %p1171_p3 }
  0x1c   : > { %1179 = shalt.err (!%p1176_p7)
}
  0x1d   : > { %s1180_s15 = scalar_lea.vmem %s1401_s28, 800  ;;  %p1188_p2 = scmp.lt.s32.totalorder %s1401_s28, %s1401_s28 }
  0x1e   : > { %p1181_p9 = scmp.ne.s32.totalorder %s1401_s28, %s1180_s15  ;;  %p1189_p6 = scmp.lt.s32.totalorder %s1180_s15, %s1180_s15 }
  0x20   : > { %p1183_p10 = pnand %p1181_p9, %p1169_p13  ;;  %p1190_p4 = por %p1189_p6, %p1188_p2 }
  0x22   : > { %p1184_p1 = pneg %p1183_p10 }
  0x24   : > { %p1191_p8 = pnand %p1190_p4, %p1184_p1 }
  0x26   : > { %1194 = shalt.err (!%p1191_p8)
}
  0x27   : > { %s1298_s16 = smov 32   ;;  %s1299_s17 = smov 2  }
  0x28   : > { %1083 = dma.hbm_to_vmem [thread:$0]  (!%p1408_p11), %s1904_s4, 800, %s1401_s28, [#allocation6], %s1298_s16, %s1298_s16, %s1299_s17  }
  0x29   : > { %p27_p2 = scmp.eq.s32.totalorder %s26_s7, 0  ;;  %p36_p1 = scmp.ne.s32.totalorder %s1291_s20, %s1287_s19 }
  0x2a   : > { %p37_p4 = scmp.eq.s32.totalorder %s1295_s21, 0  ;;  %p1093_p6 = scmp.lt.s32.totalorder %s1295_s21, 2 }
  0x2b   : > { %s1444_s8 = scalar_select %p27_p2, %s1291_s20, %s29_s6  }
  0x2c   : > { %p38_p8 = por %p37_p4, %p36_p1  ;;  %p1913_p10 = scmp.eq.s32.totalorder %s1378_s22, 1 }
  0x2d   : > { %s198_s10 = sand.u32 1, %s1291_s20   ;;  %s1070_s11 = sshll.u32 %s1295_s21, 8 }
  0x2e   : > { %p1448_p12 = por %p1913_p10, %p36_p1  ;;  %s1050_s12 = sshll.u32 %s198_s10, 4 }
  0x2f   : > { %s1457_s14 = scalar_lea.hbm %s1900_s0, %s1070_s11  ;;  %s202_s28 = scalar_lea.vmem [#allocation2], %s1050_s12 }
  0x30   : > { %s210_s6 = sshll.u32 %s202_s28, 4  ;;  %p1459_p11 = pnand %p1093_p6, %p38_p8  ;;  %s1463_s6 = int_to_ptr.vmem [resolvable:$true] %s210_s6 }
  0x31   : > { %s199_s15 = scalar_lea.sflag [#allocation3], %s198_s10  ;;  %s1195_s16 = scalar_lea.hbm %s1457_s14, 256 }
  0x32   : > { %p1196_p13 = scmp.ne.s32.totalorder %s1457_s14, %s1195_s16  ;;  %p1197_p0 = pneg %p1459_p11 }
  0x33   : > { %s1200_s27 = scalar_lea.hbm %s1900_s0, 512  ;;  %p1201_p7 = scmp.lt.u32.totalorder %s1457_s14, %s1900_s0 }
  0x34   : > { %p1198_p3 = pnand %p1197_p0, %p1196_p13  ;;  %p1202_p9 = scmp.lt.u32.totalorder %s1200_s27, %s1195_s16 }
  0x35   : > { %p1204_p1 = scmp.lt.u32.totalorder %s1195_s16, %s1457_s14 }
  0x36   : > { %p1199_p5 = pneg %p1198_p3  ;;  %p1203_p2 = por %p1202_p9, %p1201_p7 }
  0x38   : > { %p1205_p4 = por %p1204_p1, %p1203_p2 }
  0x3a   : > { %p1206_p6 = pnand %p1205_p4, %p1199_p5 }
  0x3c   : > { %1209 = shalt.err (!%p1206_p6)
}
  0x3d   : > { %s1210_s10 = scalar_lea.vmem %s1463_s6, 256  ;;  %s1300_s29 = smov [#allocation2]  }
  0x3e   : > { %p1211_p8 = scmp.ne.s32.totalorder %s1463_s6, %s1210_s10  ;;  %s1215_s13 = sshll.u32 %s1300_s29, 4  ;;  %s1216_s13 = int_to_ptr.vmem [resolvable:$false] %s1215_s13 }
  0x3f   : > { %s1217_s28 = scalar_lea.vmem %s1216_s13, 512  ;;  %p1218_p3 = scmp.lt.s32.totalorder %s1463_s6, %s1216_s13 }
  0x40   : > { %p1213_p10 = pnand %p1211_p8, %p1197_p0  ;;  %p1219_p7 = scmp.lt.s32.totalorder %s1217_s28, %s1210_s10 }
  0x42   : > { %p1214_p13 = pneg %p1213_p10  ;;  %p1220_p9 = por %p1219_p7, %p1218_p3 }
  0x44   : > { %p1221_p2 = pnand %p1220_p9, %p1214_p13 }
  0x46   : > { %1224 = shalt.err (!%p1221_p2)
}
  0x47   : > { %1087 = dma.hbm_to_vmem [thread:$0]  (!%p1459_p11), %s1457_s14, 256, %s1463_s6, %s199_s15  }
  0x48   : > { %p1916_p5 = scmp.ne.s32.totalorder %s1911_s26, 0 }
  0x49   : > { %s1493_s16 = sand.u32 (!%p1916_p5), 1, %s1287_s19   ;;  %p1917_p0 = scmp.ne.s32.totalorder (!%p1916_p5), %s1909_s24, 0 }
  0x4a   : > { %219 = sbr.rel (%p1916_p5) target bundleno = 779 (0x30b), region = 40  ;;  %s1054_s17 = sshll.u32 (!%p1916_p5), %s1493_s16, 4 }
  0x4b   : > { %s222_s23 = scalar_lea.sflag (!%p1916_p5), [#allocation3], %s1493_s16  ;;  %s225_s27 = scalar_lea.vmem (!%p1916_p5), [#allocation2], %s1054_s17 }
  0x51   : > { %1270 = dma.done.wait (%p1917_p0), %s222_s23, 256  }
  0x52   : > { %1272 = vsyncadd (%p1917_p0), %s222_s23, 4294967040  ;;  %p1918_p11 = scmp.eq.s32.totalorder %s1378_s22, 0 }
  0x54   : > { %1274 = dma.done.wait (%p1918_p11), [#allocation6], 800   ;;  %p1919_p1 = pmov %p1918_p11 }
  0x55   : > { %v1301_v0 = vmov 0   ;;  %v1507_v1 = vld [vmem:[%s225_s27 + $0x8] sm:$0xff]  ;;  %vm272_vm0 = vcmask 1043456   ;;  %v1509_v2 = vld [vmem:[%s225_s27] sm:$0xff]  ;;  %vm268_vm1 = vcmask 64512   ;;  %s1302_s7 = smov 33   ;;  %v324_v31 = vlaneseq }
  0x56   : > { %1276 = vsyncadd (%p1919_p1), [#allocation6], 4294966496  ;;  %311 = vmatprep.mubr.bf16.mxu0 %v1301_v0  ;;  %1156 = vset.pattern.permute.xlu0 %v1301_v0  ;;  %v261_v3 = vpack.c.bf16 %v1507_v1, %v1507_v1  ;;  %v260_v4 = vpack.c.bf16 %v1509_v2, %v1509_v2  ;;  %v262_v5 = vld [vmem:[%s1902_s2] sm:$0xff]  ;;  %s1303_s15 = smov 34   ;;  %s1304_s11 = smov 32   ;;  %vm882_vm2 = vcmask 588800  }
  0x57   : > { %265 = vperm.xlu0 %1156, %v262_v5   ;;  %v259_v7 = vld [vmem:[%s1901_s1] sm:$0xf]  ;;  %s1305_s12 = smov 31   ;;  %s1306_s10 = smov 30   ;;  %v332_v34 = vshrl.u32 %v324_v31, 7  ;;  %v1608_v37 = vand.u32 127, %v324_v31 }
  0x58   : > { %1057 = vmatprep.subr.msk.bf16.mxu0 %vm272_vm0, %v261_v3  ;;  %v274_v6 = vsel %vm272_vm0, %v260_v4, 0  ;;  %s1307_s29 = smov 18   ;;  %s1308_s13 = smov 17   ;;  %v1576_v15 = vld [vmem:[%s1903_s3] sm:$0xff]  ;;  %v439_v51 = vld [vmem:[#allocation5 + $0xa] sm:$0x3] }
  0x59   : > { %280 = vmatpush1.bf16.msra.mxu0 %v274_v6  ;;  %s1309_s28 = smov 16   ;;  %s1310_s23 = smov 15   ;;  %v1060_v16 = vcombine.high %v1576_v15, %v1576_v15  ;;  %v1610_v38 = vsub.s32 0, %v332_v34  ;;  %v351_v41 = vld [vmem:[#allocation5 + $0x2] sm:$0x3]  ;;  %v1616_v42 = vsub.s32 1, %v332_v34 }
  0x5a   : > { %s1311_s27 = smov 14   ;;  %s1312_s24 = smov 2   ;;  %vm347_vm3 = vcmp.lt.s32.totalorder %v1608_v37, 33  ;;  %v395_v43 = vld [vmem:[#allocation5 + $0x6] sm:$0x3]  ;;  %vm391_vm4 = vcmp.lt.s32.totalorder %v1608_v37, 31 }
  0x5b   : > { %s1313_s26 = smov 1   ;;  %s1314_s14 = smov 127   ;;  %1062 = vmatprep.mubr.msk.bf16.mxu1 %vm882_vm2, %v1060_v16  ;;  %v329_v44 = vld [vmem:[#allocation5] sm:$0x3]  ;;  %v356_v45 = vrot.slane %v351_v41, %v1610_v38  ;;  %v373_v46 = vld [vmem:[#allocation5 + $0x4] sm:$0x3]  ;;  %v404_v50 = vrot.slane %v395_v43, %v1616_v42  ;;  %v360_v52 = vrot.slane %v351_v41, %v1616_v42  ;;  %v400_v57 = vrot.slane %v395_v43, %v1610_v38 }
  0x5c   : > { %1058 = vmatmul.mubr.msk.bf16.vlgmr.msra.gmra.mrb[0].mxu0 %vm268_vm1, %v259_v7  ;;  %s1315_s6 = smov 126   ;;  %vm369_vm5 = vcmp.lt.s32.totalorder %v1608_v37, 32  ;;  %vm326_vm6 = vcmp.lt.s32.totalorder %v1608_v37, 34  ;;  %v334_v54 = vrot.slane %v329_v44, %v1610_v38  ;;  %v338_v55 = vrot.slane %v329_v44, %v1616_v42  ;;  %v417_v60 = vld [vmem:[#allocation5 + $0x8] sm:$0x3] }
  0x5d   : > { %v382_v56 = vrot.slane %v373_v46, %v1616_v42  ;;  %vm413_vm7 = vcmp.lt.s32.totalorder %v1608_v37, 30  ;;  %vm435_vm8 = vcmp.lt.s32.totalorder %v1608_v37, 18  ;;  %v448_v61 = vrot.slane %v439_v51, %v1616_v42  ;;  %v483_v16 = vld [vmem:[#allocation5 + $0xe] sm:$0x3] }
  0x5e   : > { %vm479_vm9 = vcmp.lt.s32.totalorder %v1608_v37, 16  ;;  %v444_v44 = vrot.slane %v439_v51, %v1610_v38  ;;  %vm457_vm10 = vcmp.lt.s32.totalorder %v1608_v37, 17  ;;  %vm523_vm11 = vcmp.lt.s32.totalorder %v1608_v37, 14 }
  0x5f   : > { %vm501_vm12 = vcmp.lt.s32.totalorder %v1608_v37, 15  ;;  %vm567_vm13 = vcmp.lt.s32.totalorder %v1608_v37, 1  ;;  %vm545_vm14 = vcmp.lt.s32.totalorder %v1608_v37, 2  ;;  %vm589_vm15 = vcmp.lt.s32.totalorder %v1608_v37, 127 }
  0x60   : > { %vm633_vm1 = vcmp.lt.s32.totalorder %v1608_v37, 114  ;;  %vm611_vm2 = vcmp.lt.s32.totalorder %v1608_v37, 126 }
  0xd6   : > { %v266_v8 = vpop.permute.xlu0 %265 }
 0x12f   : > { %v313_v9 = vpop.f32.mrb[0].mxu0 }
 0x130   : > { %v1523_v10 = vadd.f32 %v313_v9, %v266_v8  ;;  %v315_v11 = vpop.f32.mrb[1].mxu0 }
 0x131   : > { %v317_v12 = vpop.f32.mrb[2].mxu0  ;;  %v1528_v14 = vadd.f32 %v315_v11, %v266_v8  ;;  %v378_v11 = vrot.slane %v373_v46, %v1610_v38 }
 0x132   : > { %v318_v13 = vpop.f32.mrb[3].mxu0  ;;  %343 = vrot.lane.b32.xlu1 %v1523_v10, %s1302_s7  ;;  %320 = vrot.lane.b32.xlu0 %v1523_v10, %s1303_s15  ;;  %v426_v12 = vrot.slane %v417_v60, %v1616_v42 }
 0x136   : > { %365 = vrot.lane.b32.xlu1 %v1523_v10, %s1304_s11  ;;  %345 = vrot.lane.b32.xlu0 %v1528_v14, %s1302_s7  ;;  %s1316_s7 = smov 114  }
 0x13a   : > { %387 = vrot.lane.b32.xlu1 %v1523_v10, %s1305_s12  ;;  %367 = vrot.lane.b32.xlu0 %v1528_v14, %s1304_s11  ;;  %s1317_s11 = smov 113  }
 0x13e   : > { %409 = vrot.lane.b32.xlu1 %v1523_v10, %s1306_s10  ;;  %389 = vrot.lane.b32.xlu0 %v1528_v14, %s1305_s12  ;;  %s1319_s12 = smov 111  }
 0x142   : > { %431 = vrot.lane.b32.xlu1 %v1523_v10, %s1307_s29  ;;  %411 = vrot.lane.b32.xlu0 %v1528_v14, %s1306_s10  ;;  %s1320_s10 = smov 110  }
 0x146   : > { %453 = vrot.lane.b32.xlu1 %v1523_v10, %s1308_s13  ;;  %433 = vrot.lane.b32.xlu0 %v1528_v14, %s1307_s29  ;;  %s1321_s29 = smov 98  }
 0x14a   : > { %475 = vrot.lane.b32.xlu1 %v1523_v10, %s1309_s28  ;;  %455 = vrot.lane.b32.xlu0 %v1528_v14, %s1308_s13  ;;  %s1322_s13 = smov 97  }
 0x14e   : > { %497 = vrot.lane.b32.xlu1 %v1523_v10, %s1310_s23  ;;  %477 = vrot.lane.b32.xlu0 %v1528_v14, %s1309_s28  ;;  %s1323_s28 = smov 96  }
 0x152   : > { %519 = vrot.lane.b32.xlu1 %v1523_v10, %s1311_s27  ;;  %499 = vrot.lane.b32.xlu0 %v1528_v14, %s1310_s23 }
 0x156   : > { %541 = vrot.lane.b32.xlu1 %v1523_v10, %s1312_s24  ;;  %521 = vrot.lane.b32.xlu0 %v1528_v14, %s1311_s27 }
 0x15a   : > { %563 = vrot.lane.b32.xlu1 %v1523_v10, %s1313_s26  ;;  %543 = vrot.lane.b32.xlu0 %v1528_v14, %s1312_s24  ;;  %s1324_s24 = smov 95  }
 0x15e   : > { %322 = vrot.lane.b32.xlu1 %v1528_v14, %s1303_s15  ;;  %565 = vrot.lane.b32.xlu0 %v1528_v14, %s1313_s26  ;;  %s1318_s15 = smov 112   ;;  %s1325_s26 = smov 94  }
 0x162   : > { %585 = vrot.lane.b32.xlu1 %v1523_v10, %s1314_s14  ;;  %587 = vrot.lane.b32.xlu0 %v1528_v14, %s1314_s14  ;;  %s1071_s14 = sshll.u32 %s1378_s22, 8  ;;  %s952_s22 = scalar_lea.sflag [#allocation4], %s1493_s16 }
 0x166   : > { %607 = vrot.lane.b32.xlu1 %v1523_v10, %s1315_s6  ;;  %609 = vrot.lane.b32.xlu0 %v1528_v14, %s1315_s6  ;;  %s255_s6 = scalar_lea.vmem [#allocation7], %s1054_s17 }
 0x16a   : > { %629 = vrot.lane.b32.xlu1 %v1523_v10, %s1316_s7  ;;  %631 = vrot.lane.b32.xlu0 %v1528_v14, %s1316_s7  ;;  %s966_s7 = sshll.u32 %s255_s6, 4  ;;  %s1858_s7 = int_to_ptr.vmem [resolvable:$true] %s966_s7 }
 0x16b   : > { %s1225_s17 = scalar_lea.vmem %s1858_s7, 256 }
 0x16c   : > { %p1226_p4 = scmp.ne.s32.totalorder %s1858_s7, %s1225_s17 }
 0x16e   : > { %651 = vrot.lane.b32.xlu1 %v1523_v10, %s1317_s11  ;;  %653 = vrot.lane.b32.xlu0 %v1528_v14, %s1317_s11  ;;  %p1227_p6 = pnand %p1226_p4, %p1448_p12 }
 0x170   : > { %p1228_p8 = pneg %p1227_p6 }
 0x172   : > { %673 = vrot.lane.b32.xlu1 %v1523_v10, %s1318_s15  ;;  %675 = vrot.lane.b32.xlu0 %v1528_v14, %s1318_s15 }
 0x176   : > { %695 = vrot.lane.b32.xlu1 %v1523_v10, %s1319_s12  ;;  %697 = vrot.lane.b32.xlu0 %v1528_v14, %s1319_s12  ;;  %s1856_s12 = scalar_lea.hbm %s1905_s5, %s1071_s14 }
 0x17a   : > { %717 = vrot.lane.b32.xlu1 %v1523_v10, %s1320_s10  ;;  %719 = vrot.lane.b32.xlu0 %v1528_v14, %s1320_s10  ;;  %s1326_s10 = smov [#allocation7]  }
 0x17e   : > { %739 = vrot.lane.b32.xlu1 %v1523_v10, %s1321_s29  ;;  %741 = vrot.lane.b32.xlu0 %v1528_v14, %s1321_s29  ;;  %s1229_s29 = sshll.u32 %s1326_s10, 4  ;;  %s1230_s29 = int_to_ptr.vmem [resolvable:$false] %s1229_s29 }
 0x17f   : > { %p1232_p10 = scmp.lt.s32.totalorder %s1858_s7, %s1230_s29 }
 0x182   : > { %761 = vrot.lane.b32.xlu1 %v1523_v10, %s1322_s13  ;;  %763 = vrot.lane.b32.xlu0 %v1528_v14, %s1322_s13  ;;  %s1231_s13 = scalar_lea.vmem %s1230_s29, 512 }
 0x183   : > { %p1233_p13 = scmp.lt.s32.totalorder %s1231_s13, %s1225_s17 }
 0x185   : > { %p1234_p3 = por %p1233_p13, %p1232_p10 }
 0x186   : > { %783 = vrot.lane.b32.xlu1 %v1523_v10, %s1323_s28  ;;  %785 = vrot.lane.b32.xlu0 %v1528_v14, %s1323_s28 }
 0x187   : > { %p1235_p7 = pnand %p1234_p3, %p1228_p8 }
 0x18a   : > { %805 = vrot.lane.b32.xlu1 %v1523_v10, %s1324_s24  ;;  %807 = vrot.lane.b32.xlu0 %v1528_v14, %s1324_s24 }
 0x18e   : > { %827 = vrot.lane.b32.xlu1 %v1523_v10, %s1325_s26  ;;  %829 = vrot.lane.b32.xlu0 %v1528_v14, %s1325_s26 }
 0x1a4   : > { %v344_v17 = vpop.permute.xlu1 %343  ;;  %v321_v18 = vpop.permute.xlu0 %320 }
 0x1a8   : > { %v1584_v19 = vpop.permute.xlu1 %365  ;;  %v346_v20 = vpop.permute.xlu0 %345 }
 0x1a9   : > { %v349_v49 = vsel %vm347_vm3, %v346_v20, %v344_v17  ;;  %v348_v53 = vsel %vm347_vm3, %v344_v17, %v346_v20  ;;  %v461_v20 = vld [vmem:[#allocation5 + $0xc] sm:$0x3]  ;;  %vm677_vm3 = vcmp.lt.s32.totalorder %v1608_v37, 112 }
 0x1aa   : > { %v363_v59 = vmul.f32 %v356_v45, %v349_v49  ;;  %v364_v5 = vmul.f32 %v360_v52, %v348_v53  ;;  %v492_v45 = vrot.slane %v483_v16, %v1616_v42  ;;  %v470_v52 = vrot.slane %v461_v20, %v1616_v42  ;;  %v527_v53 = vld [vmem:[#allocation5 + $0x12] sm:$0x3] }
 0x1ac   : > { %v388_v21 = vpop.permute.xlu1 %387  ;;  %v368_v22 = vpop.permute.xlu0 %367 }
 0x1ad   : > { %v370_v0 = vsel %vm369_vm5, %v1584_v19, %v368_v22  ;;  %v371_v17 = vsel %vm369_vm5, %v368_v22, %v1584_v19  ;;  %vm721_vm5 = vcmp.lt.s32.totalorder %v1608_v37, 110 }
 0x1ae   : > { %v385_v49 = vmul.f32 %v378_v11, %v371_v17 }
 0x1b0   : > { %v1586_v23 = vpop.permute.xlu1 %409  ;;  %v390_v24 = vpop.permute.xlu0 %389 }
 0x1b1   : > { %v392_v58 = vsel %vm391_vm4, %v388_v21, %v390_v24  ;;  %v393_v6 = vsel %vm391_vm4, %v390_v24, %v388_v21  ;;  %vm655_vm4 = vcmp.lt.s32.totalorder %v1608_v37, 113 }
 0x1b2   : > { %v408_v7 = vmul.f32 %v404_v50, %v392_v58  ;;  %v407_v41 = vmul.f32 %v400_v57, %v393_v6  ;;  %v422_v50 = vrot.slane %v417_v60, %v1610_v38  ;;  %v571_v6 = vld [vmem:[#allocation5 + $0x16] sm:$0x3] }
 0x1b3   : > { %v580_v17 = vrot.slane %v571_v6, %v1616_v42 }
 0x1b4   : > { %v1588_v25 = vpop.permute.xlu1 %431  ;;  %v1590_v26 = vpop.permute.xlu0 %411 }
 0x1b5   : > { %v414_v43 = vsel %vm413_vm7, %v1586_v23, %v1590_v26 }
 0x1b8   : > { %v1592_v27 = vpop.permute.xlu1 %453  ;;  %v1594_v28 = vpop.permute.xlu0 %433 }
 0x1b9   : > { %v436_v13 = vsel %vm435_vm8, %v1588_v25, %v1594_v28  ;;  %v437_v19 = vsel %vm435_vm8, %v1594_v28, %v1588_v25  ;;  %v415_v25 = vsel %vm413_vm7, %v1590_v26, %v1586_v23  ;;  %v430_v28 = vmul.f32 %v426_v12, %v414_v43 }
 0x1ba   : > { %v452_v22 = vmul.f32 %v448_v61, %v436_v13  ;;  %v451_v58 = vmul.f32 %v444_v44, %v437_v19  ;;  %v852_v23 = vpack.c.bf16 %v407_v41, %v385_v49  ;;  %v536_v61 = vrot.slane %v527_v53, %v1616_v42  ;;  %v549_v13 = vld [vmem:[#allocation5 + $0x14] sm:$0x3]  ;;  %v593_v41 = vld [vmem:[#allocation5 + $0x1a] sm:$0x3] }
 0x1bb   : > { %vm743_vm7 = vcmp.lt.s32.totalorder %v1608_v37, 98  ;;  %vm765_vm8 = vcmp.lt.s32.totalorder %v1608_v37, 97 }
 0x1bc   : > { %v1596_v29 = vpop.permute.xlu1 %475  ;;  %v1598_v30 = vpop.permute.xlu0 %455 }
 0x1c0   : > { %v1600_v32 = vpop.permute.xlu1 %497  ;;  %v1602_v33 = vpop.permute.xlu0 %477 }
 0x1c1   : > { %v480_v51 = vsel %vm479_vm9, %v1596_v29, %v1602_v33  ;;  %v481_v26 = vsel %vm479_vm9, %v1602_v33, %v1596_v29  ;;  %v459_v29 = vsel %vm457_vm10, %v1598_v30, %v1592_v27  ;;  %vm787_vm9 = vcmp.lt.s32.totalorder %v1608_v37, 96 }
 0x1c2   : > { %v496_v60 = vmul.f32 %v492_v45, %v480_v51 }
 0x1c4   : > { %v1604_v35 = vpop.permute.xlu1 %519  ;;  %v1606_v36 = vpop.permute.xlu0 %499 }
 0x1c5   : > { %v502_v12 = vsel %vm501_vm12, %v1600_v32, %v1606_v36  ;;  %v503_v43 = vsel %vm501_vm12, %v1606_v36, %v1600_v32 }
 0x1c8   : > { %v1612_v39 = vpop.permute.xlu1 %541  ;;  %v1614_v40 = vpop.permute.xlu0 %521 }
 0x1cc   : > { %v1621_v47 = vpop.permute.xlu1 %563  ;;  %v1623_v48 = vpop.permute.xlu0 %543 }
 0x1cd   : > { %v546_v45 = vsel %vm545_vm14, %v1612_v39, %v1623_v48 }
 0x1d0   : > { %v323_v62 = vpop.permute.xlu1 %322  ;;  %v1638_v63 = vpop.permute.xlu0 %565 }
 0x1d1   : > { %v327_v3 = vsel %vm326_vm6, %v321_v18, %v323_v62  ;;  %v328_v4 = vsel %vm326_vm6, %v323_v62, %v321_v18  ;;  %v386_v18 = vmul.f32 %v382_v56, %v370_v0  ;;  %v855_v62 = vpack.c.bf16 %v452_v22, %v430_v28  ;;  %v637_v28 = vld [vmem:[#allocation5 + $0x1e] sm:$0x3] }
 0x1d2   : > { %v341_v8 = vmul.f32 %v334_v54, %v328_v4  ;;  %v342_v9 = vmul.f32 %v338_v55, %v327_v3  ;;  %v488_v54 = vrot.slane %v483_v16, %v1610_v38  ;;  %v505_v55 = vld [vmem:[#allocation5 + $0x10] sm:$0x3]  ;;  %v429_v0 = vmul.f32 %v422_v50, %v415_v25 }
 0x1d3   : > { %v853_v46 = vpack.c.bf16 %v408_v7, %v386_v18  ;;  %v466_v3 = vrot.slane %v461_v20, %v1610_v38  ;;  %v514_v4 = vrot.slane %v505_v55, %v1616_v42  ;;  %v532_v7 = vrot.slane %v527_v53, %v1610_v38 }
 0x1d4   : > { %v1655_v21 = vpop.permute.xlu1 %585  ;;  %v1657_v24 = vpop.permute.xlu0 %587  ;;  %v851_v31 = vpack.c.bf16 %v364_v5, %v342_v9  ;;  %v850_v34 = vpack.c.bf16 %v363_v59, %v341_v8  ;;  %v458_v59 = vsel %vm457_vm10, %v1592_v27, %v1598_v30  ;;  %v524_v5 = vsel %vm523_vm11, %v1604_v35, %v1614_v40 }
 0x1d5   : > { %v474_v33 = vmul.f32 %v470_v52, %v458_v59  ;;  %v495_v11 = vmul.f32 %v488_v54, %v481_v26  ;;  %v854_v27 = vpack.c.bf16 %v451_v58, %v429_v0  ;;  %v525_v30 = vsel %vm523_vm11, %v1614_v40, %v1604_v35 }
 0x1d6   : > { %892 = vmatprep.subr.bf16.mxu1 %v851_v31  ;;  %v540_v16 = vmul.f32 %v536_v61, %v524_v5  ;;  %v473_v20 = vmul.f32 %v466_v3, %v459_v29  ;;  %v510_v31 = vrot.slane %v505_v55, %v1610_v38  ;;  %v518_v35 = vmul.f32 %v514_v4, %v502_v12  ;;  %v681_v3 = vld [vmem:[#allocation5 + $0x22] sm:$0x3] }
 0x1d7   : > { %893 = vmatpush1.bf16.msra.mxu1 %v850_v34  ;;  %v857_v18 = vpack.c.bf16 %v496_v60, %v474_v33  ;;  %v568_v34 = vsel %vm567_vm13, %v1621_v47, %v1638_v63  ;;  %v558_v40 = vrot.slane %v549_v13, %v1616_v42  ;;  %v539_v22 = vmul.f32 %v532_v7, %v525_v30 }
 0x1d8   : > { %v1682_v56 = vpop.permute.xlu1 %607  ;;  %894 = vmatprep.subr.bf16.mxu1 %v853_v46  ;;  %v1684_v57 = vpop.permute.xlu0 %609  ;;  %v576_v46 = vrot.slane %v571_v6, %v1610_v38  ;;  %v856_v49 = vpack.c.bf16 %v495_v11, %v473_v20  ;;  %v569_v32 = vsel %vm567_vm13, %v1638_v63, %v1621_v47  ;;  %v584_v36 = vmul.f32 %v580_v17, %v568_v34  ;;  %v659_v6 = vld [vmem:[#allocation5 + $0x20] sm:$0x3] }
 0x1d9   : > { %v602_v50 = vrot.slane %v593_v41, %v1616_v42  ;;  %v859_v52 = vpack.c.bf16 %v540_v16, %v518_v35  ;;  %v517_v51 = vmul.f32 %v510_v31, %v503_v43  ;;  %v554_v53 = vrot.slane %v549_v13, %v1610_v38  ;;  %v703_v31 = vld [vmem:[#allocation5 + $0x24] sm:$0x3] }
 0x1da   : > { %v591_v25 = vsel %vm589_vm15, %v1657_v24, %v1655_v21  ;;  %v547_v54 = vsel %vm545_vm14, %v1623_v48, %v1612_v39  ;;  %v562_v47 = vmul.f32 %v558_v40, %v546_v45  ;;  %v583_v58 = vmul.f32 %v576_v46, %v569_v32 }
 0x1db   : > { %895 = vmatpush1.bf16.msra.mxu1 %v852_v23  ;;  %v598_v59 = vrot.slane %v593_v41, %v1610_v38  ;;  %v615_v23 = vld [vmem:[#allocation5 + $0x1c] sm:$0x3]  ;;  %v858_v26 = vpack.c.bf16 %v539_v22, %v517_v51  ;;  %v590_v60 = vsel %vm589_vm15, %v1655_v21, %v1657_v24  ;;  %v606_v61 = vmul.f32 %v602_v50, %v591_v25 }
 0x1dc   : > { %v1708_v8 = vpop.permute.xlu1 %629  ;;  %896 = vmatprep.subr.bf16.mxu1 %v855_v62  ;;  %v1710_v9 = vpop.permute.xlu0 %631  ;;  %v646_v39 = vrot.slane %v637_v28, %v1616_v42  ;;  %v861_v48 = vpack.c.bf16 %v584_v36, %v562_v47  ;;  %v561_v62 = vmul.f32 %v554_v53, %v547_v54  ;;  %v624_v4 = vrot.slane %v615_v23, %v1616_v42  ;;  %v769_v36 = vld [vmem:[#allocation5 + $0x2a] sm:$0x3]  ;;  %v747_v54 = vld [vmem:[#allocation5 + $0x28] sm:$0x3] }
 0x1dd   : > { %v635_v0 = vsel %vm633_vm1, %v1710_v9, %v1708_v8  ;;  %v642_v5 = vrot.slane %v637_v28, %v1610_v38  ;;  %v605_v29 = vmul.f32 %v598_v59, %v590_v60  ;;  %v613_v33 = vsel %vm611_vm2, %v1684_v57, %v1682_v56 }
 0x1de   : > { %v860_v7 = vpack.c.bf16 %v583_v58, %v561_v62  ;;  %v634_v11 = vsel %vm633_vm1, %v1708_v8, %v1710_v9  ;;  %v650_v12 = vmul.f32 %v646_v39, %v635_v0  ;;  %v690_v13 = vrot.slane %v681_v3, %v1616_v42 }
 0x1df   : > { %897 = vmatpush1.bf16.msra.mxu1 %v854_v27  ;;  %v863_v27 = vpack.c.bf16 %v606_v61, %v1528_v14  ;;  %v620_v30 = vrot.slane %v615_v23, %v1610_v38  ;;  %v668_v16 = vrot.slane %v659_v6, %v1616_v42  ;;  %v612_v20 = vsel %vm611_vm2, %v1682_v56, %v1684_v57 }
 0x1e0   : > { %v1733_v44 = vpop.permute.xlu1 %651  ;;  %898 = vmatprep.subr.bf16.mxu1 %v857_v18  ;;  %v1735_v19 = vpop.permute.xlu0 %653  ;;  %v725_v18 = vld [vmem:[#allocation5 + $0x26] sm:$0x3]  ;;  %v628_v8 = vmul.f32 %v624_v4, %v613_v33  ;;  %v686_v9 = vrot.slane %v681_v3, %v1610_v38  ;;  %v649_v41 = vmul.f32 %v642_v5, %v634_v11  ;;  %vm699_vm6 = vcmp.lt.s32.totalorder %v1608_v37, 111 }
 0x1e1   : > { %v657_v43 = vsel %vm655_vm4, %v1735_v19, %v1733_v44  ;;  %v862_v35 = vpack.c.bf16 %v605_v29, %v1523_v10  ;;  %v734_v40 = vrot.slane %v725_v18, %v1616_v42  ;;  %v627_v45 = vmul.f32 %v620_v30, %v612_v20  ;;  %v835_v20 = vld [vmem:[#allocation5 + $0x30] sm:$0x3] }
 0x1e2   : > { %v865_v22 = vpack.c.bf16 %v650_v12, %v628_v8  ;;  %v664_v46 = vrot.slane %v659_v6, %v1610_v38  ;;  %v656_v10 = vsel %vm655_vm4, %v1733_v44, %v1735_v19  ;;  %v672_v50 = vmul.f32 %v668_v16, %v657_v43 }
 0x1e3   : > { %899 = vmatpush1.bf16.msra.mxu1 %v856_v49  ;;  %v712_v49 = vrot.slane %v703_v31, %v1616_v42  ;;  %v864_v47 = vpack.c.bf16 %v649_v41, %v627_v45  ;;  %v708_v59 = vrot.slane %v703_v31, %v1610_v38  ;;  %v756_v60 = vrot.slane %v747_v54, %v1616_v42 }
 0x1e4   : > { %v674_v63 = vpop.permute.xlu1 %673  ;;  %900 = vmatprep.subr.bf16.mxu1 %v859_v52  ;;  %v676_v55 = vpop.permute.xlu0 %675  ;;  %v730_v52 = vrot.slane %v725_v18, %v1610_v38  ;;  %v671_v58 = vmul.f32 %v664_v46, %v656_v10  ;;  %v774_v39 = vrot.slane %v769_v36, %v1610_v38  ;;  %v752_v33 = vrot.slane %v747_v54, %v1610_v38 }
 0x1e5   : > { %v679_v17 = vsel %vm677_vm3, %v676_v55, %v674_v63  ;;  %v678_v56 = vsel %vm677_vm3, %v674_v63, %v676_v55  ;;  %v778_v55 = vrot.slane %v769_v36, %v1616_v42  ;;  %vm809_vm10 = vcmp.lt.s32.totalorder %v1608_v37, 95 }
 0x1e6   : > { %v694_v57 = vmul.f32 %v690_v13, %v679_v17  ;;  %v693_v25 = vmul.f32 %v686_v9, %v678_v56  ;;  %vm831_vm11 = vcmp.lt.s32.totalorder %v1608_v37, 94  ;;  %v840_v56 = vrot.slane %v835_v20, %v1610_v38 }
 0x1e7   : > { %901 = vmatpush1.bf16.msra.mxu1 %v858_v26  ;;  %v844_v45 = vrot.slane %v835_v20, %v1616_v42 }
 0x1e8   : > { %v696_v21 = vpop.permute.xlu1 %695  ;;  %902 = vmatprep.subr.bf16.mxu1 %v861_v48  ;;  %v698_v24 = vpop.permute.xlu0 %697  ;;  %v867_v19 = vpack.c.bf16 %v694_v57, %v672_v50  ;;  %v866_v4 = vpack.c.bf16 %v693_v25, %v671_v58 }
 0x1e9   : > { %v701_v28 = vsel %vm699_vm6, %v698_v24, %v696_v21  ;;  %v700_v23 = vsel %vm699_vm6, %v696_v21, %v698_v24  ;;  %v791_v24 = vld [vmem:[#allocation5 + $0x2c] sm:$0x3] }
 0x1ea   : > { %v716_v26 = vmul.f32 %v712_v49, %v701_v28  ;;  %v715_v29 = vmul.f32 %v708_v59, %v700_v23  ;;  %v796_v16 = vrot.slane %v791_v24, %v1610_v38  ;;  %v800_v17 = vrot.slane %v791_v24, %v1616_v42 }
 0x1eb   : > { %903 = vmatpush1.bf16.msra.mxu1 %v860_v7  ;;  %v813_v7 = vld [vmem:[#allocation5 + $0x2e] sm:$0x3] }
 0x1ec   : > { %v718_v34 = vpop.permute.xlu1 %717  ;;  %904 = vmatprep.subr.bf16.mxu1 %v863_v27  ;;  %v720_v14 = vpop.permute.xlu0 %719  ;;  %v818_v9 = vrot.slane %v813_v7, %v1610_v38  ;;  %v822_v31 = vrot.slane %v813_v7, %v1616_v42 }
 0x1ed   : > { %v723_v32 = vsel %vm721_vm5, %v720_v14, %v718_v34  ;;  %v722_v63 = vsel %vm721_vm5, %v718_v34, %v720_v14 }
 0x1ee   : > { %v738_v44 = vmul.f32 %v734_v40, %v723_v32  ;;  %v737_v62 = vmul.f32 %v730_v52, %v722_v63  ;;  %v1059_v63 = vcombine.low %v1576_v15, %v1576_v15 }
 0x1ef   : > { %905 = vmatpush1.bf16.msra.mxu1 %v862_v35 }
 0x1f0   : > { %v740_v51 = vpop.permute.xlu1 %739  ;;  %906 = vmatprep.subr.bf16.mxu1 %v865_v22  ;;  %v742_v53 = vpop.permute.xlu0 %741  ;;  %v869_v21 = vpack.c.bf16 %v738_v44, %v716_v26  ;;  %v868_v18 = vpack.c.bf16 %v737_v62, %v715_v29 }
 0x1f1   : > { %v745_v0 = vsel %vm743_vm7, %v742_v53, %v740_v51  ;;  %v744_v11 = vsel %vm743_vm7, %v740_v51, %v742_v53 }
 0x1f2   : > { %v760_v12 = vmul.f32 %v756_v60, %v745_v0  ;;  %v759_v34 = vmul.f32 %v752_v33, %v744_v11 }
 0x1f3   : > { %907 = vmatpush1.bf16.msra.mxu1 %v864_v47 }
 0x1f4   : > { %v762_v61 = vpop.permute.xlu1 %761  ;;  %908 = vmatprep.subr.bf16.mxu1 %v867_v19  ;;  %v764_v48 = vpop.permute.xlu0 %763 }
 0x1f5   : > { %v767_v3 = vsel %vm765_vm8, %v764_v48, %v762_v61  ;;  %v766_v5 = vsel %vm765_vm8, %v762_v61, %v764_v48 }
 0x1f6   : > { %v782_v6 = vmul.f32 %v778_v55, %v767_v3  ;;  %v781_v30 = vmul.f32 %v774_v39, %v766_v5 }
 0x1f7   : > { %909 = vmatpush1.bf16.msra.mxu1 %v866_v4 }
 0x1f8   : > { %v784_v13 = vpop.permute.xlu1 %783  ;;  %910 = vmatprep.subr.bf16.mxu1 %v869_v21  ;;  %v786_v27 = vpop.permute.xlu0 %785  ;;  %v871_v8 = vpack.c.bf16 %v782_v6, %v760_v12  ;;  %v870_v22 = vpack.c.bf16 %v781_v30, %v759_v34 }
 0x1f9   : > { %v788_v14 = vsel %vm787_vm9, %v784_v13, %v786_v27  ;;  %v789_v41 = vsel %vm787_vm9, %v786_v27, %v784_v13 }
 0x1fa   : > { %v803_v46 = vmul.f32 %v796_v16, %v788_v14  ;;  %v804_v49 = vmul.f32 %v800_v17, %v789_v41 }
 0x1fb   : > { %911 = vmatpush1.bf16.msra.mxu1 %v868_v18 }
 0x1fc   : > { %v806_v43 = vpop.permute.xlu1 %805  ;;  %912 = vmatprep.subr.bf16.mxu1 %v871_v8  ;;  %v808_v35 = vpop.permute.xlu0 %807 }
 0x1fd   : > { %v810_v57 = vsel %vm809_vm10, %v806_v43, %v808_v35  ;;  %v811_v40 = vsel %vm809_vm10, %v808_v35, %v806_v43 }
 0x1fe   : > { %v825_v32 = vmul.f32 %v818_v9, %v810_v57  ;;  %v826_v36 = vmul.f32 %v822_v31, %v811_v40 }
 0x1ff   : > { %913 = vmatpush1.bf16.msra.mxu1 %v870_v22 }
 0x200   : > { %v828_v10 = vpop.permute.xlu1 %827  ;;  %v830_v50 = vpop.permute.xlu0 %829  ;;  %v873_v52 = vpack.c.bf16 %v826_v36, %v804_v49  ;;  %v872_v51 = vpack.c.bf16 %v825_v32, %v803_v46 }
 0x201   : > { %v832_v53 = vsel %vm831_vm11, %v828_v10, %v830_v50  ;;  %v833_v38 = vsel %vm831_vm11, %v830_v50, %v828_v10 }
 0x202   : > { %v847_v25 = vmul.f32 %v840_v56, %v832_v53  ;;  %v848_v28 = vmul.f32 %v844_v45, %v833_v38  ;;  %914 = vmatprep.subr.bf16.mxu1 %v873_v52 }
 0x203   : > { %915 = vmatpush1.bf16.msra.mxu1 %v872_v51 }
 0x204   : > { %v874_v42 = vpack.c.bf16 %v847_v25, %v847_v25  ;;  %v875_v54 = vpack.c.bf16 %v848_v28, %v848_v28 }
 0x206   : > { %1061 = vmatprep.subr.msk.bf16.mxu1 %vm272_vm0, %v875_v54  ;;  %v887_v47 = vsel %vm272_vm0, %v874_v42, 0 }
 0x207   : > { %917 = vmatpush1.bf16.msra.mxu1 %v887_v47 }
 0x20a   : > { %925 = vmatmul.mubr.bf16.vlgmr.msra.gmra.mrb[0].mxu1 %v1059_v63 }
 0x2dd   : > { %v926_v44 = vpop.f32.mrb[0].mxu1 }
 0x2de   : > { %v1063_v19 = vmul.f32 -1.442695, %v926_v44  ;;  %v928_v37 = vpop.f32.mrb[1].mxu1 }
 0x2df   : > { %v1064_v55 = vmul.f32 -1.442695, %v928_v37  ;;  %v930_v58 = vpop.f32.mrb[2].mxu1 }
 0x2e0   : > { %1159 = vpow2.f32 %v1063_v19  ;;  %v931_v59 = vpop.f32.mrb[3].mxu1 }
 0x2e1   : > { %1161 = vpow2.f32 %v1064_v55 }
 0x2ea   : > { %v1160_v23 = vpop.eup %1159 }
 0x2eb   : > { %v1162_v26 = vpop.eup %1161  ;;  %v939_v60 = vadd.f32 1.0, %v1160_v23 }
 0x2ec   : > { %v940_v61 = vadd.f32 1.0, %v1162_v26 }
 0x2ed   : > { %1163 = vrcp.f32 %v939_v60 }
 0x2ee   : > { %1165 = vrcp.f32 %v940_v61 }
 0x2f7   : > { %v1164_v15 = vpop.eup %1163 }
 0x2f8   : > { %v1166_v39 = vpop.eup %1165  ;;  %v945_v48 = vadd.f32 1.0, %v1164_v15 }
 0x2f9   : > { %v946_v62 = vadd.f32 1.0, %v1166_v39 }
 0x2fa   : > { %v947_v0 = vmul.f32 %v945_v48, %v1509_v2 }
 0x2fb   : > { %v948_v3 = vmul.f32 %v946_v62, %v1507_v1 }
 0x2fc   : > { %949 = vst [vmem:[%s255_s6] sm:$0xff] %v947_v0 }
 0x2fd   : > { %950 = vst [vmem:[%s255_s6 + $0x8] sm:$0xff] %v948_v3 }
 0x2fe   : > { %1238 = shalt.err (!%p1235_p7)
}
 0x2ff   : > { %s1239_s16 = scalar_lea.hbm %s1856_s12, 256  ;;  %s1243_s27 = scalar_lea.hbm %s1905_s5, 512 }
 0x300   : > { %p1240_p9 = scmp.ne.s32.totalorder %s1856_s12, %s1239_s16  ;;  %p1244_p0 = scmp.lt.u32.totalorder %s1856_s12, %s1905_s5 }
 0x301   : > { %p1245_p11 = scmp.lt.u32.totalorder %s1243_s27, %s1239_s16  ;;  %p1247_p4 = scmp.lt.u32.totalorder %s1239_s16, %s1856_s12 }
 0x302   : > { %p1241_p2 = pnand %p1240_p9, %p1448_p12 }
 0x303   : > { %p1246_p1 = por %p1245_p11, %p1244_p0 }
 0x304   : > { %p1242_p5 = pneg %p1241_p2 }
 0x305   : > { %p1248_p6 = por %p1247_p4, %p1246_p1 }
 0x307   : > { %p1249_p8 = pnand %p1248_p6, %p1242_p5 }
 0x309   : > { %1252 = shalt.err (!%p1249_p8)
}
 0x30a   : > { %1078 = dma.vmem_to_hbm [thread:$0]  (%p1448_p12), %s1858_s7, 256, %s1856_s12, %s952_s22  }
 0x30b PF: > { %s978_s14 = sand.u32 1, %s1283_s18   ;;  %p1920_p10 = scmp.ne.s32.totalorder %s1910_s25, 0 }
 0x30c   : > { %p1921_p13 = scmp.ge.s32.totalorder %s1295_s21, 2  ;;  %s979_s6 = scalar_lea.sflag [#allocation4], %s978_s14 }
 0x30e   : > { %p1089_p3 = pnand %p1921_p13, %p1920_p10 }
 0x310   : > { %1278 = dma.done.wait (!%p1089_p3), %s979_s6, 256  }
 0x311   : > { %1280 = vsyncadd (!%p1089_p3), %s979_s6, 4294967040  ;;  %p19_p7 = scmp.ge.s32.totalorder %s1413_s30, 4   ;;  %s1922_s18 = smov %s1287_s19 }
 0x312   : > { %s1923_s19 = smov %s1291_s20  ;;  %s1924_s20 = smov %s1444_s8 }
 0x313   : > { %s1925_s21 = smov %s1413_s30  ;;  %21 = sbr.rel (!%p19_p7) target bundleno = 6 (0x6), region = 112 }
 0x31a   :  { %984 = vsyncpa [#allocation3], 1 }
 0x31b   :  { %986 = vsyncpa [#allocation3 + $0x1], 1 }
 0x31c   :  { %987 = vsyncpa [#allocation6], 1 }
 0x31d   :  { %988 = vsyncpa [#allocation4], 1 }
 0x31e   :  { %990 = vsyncpa [#allocation4 + $0x1], 1 }

</bundles_post_ra>
